<compile_context>
chip_gen: v7x
topology: tpu7x:2x2x1
jax: 0.10.0
libtpu: 0.0.40
codegen_flags: <defaults>
</compile_context>

<pallas_src>
import functools

import jax
import jax.numpy as jnp
from jax import lax
from jax.experimental import pallas as pl
from jax.experimental.pallas import tpu as pltpu

# Contract the last (N) dim of both operands -> A @ B^T without materializing
# a transpose (same dimension numbers the TPU flash-attention kernel uses).
_NT_DIMS = (((1,), (1,)), ((), ()))


# ---------------------------------------------------------------------------
# Kernel 1: accumulate energy = X @ X^T over N tiles, then fused softmax.
# ---------------------------------------------------------------------------
def _energy_softmax_kernel(x_ref, attn_ref, acc_ref, *, precision):
    k = pl.program_id(1)

    @pl.when(k == 0)
    def _():
        acc_ref[...] = jnp.zeros_like(acc_ref)

    xt = x_ref[0]  # (C, TN), native dtype (bf16 stays bf16 on the MXU)
    acc_ref[...] += lax.dot_general(
        xt, xt,
        dimension_numbers=_NT_DIMS,
        preferred_element_type=jnp.float32,
        precision=precision,
    )

    @pl.when(k == pl.num_programs(1) - 1)
    def _():
        energy = acc_ref[...]                                   # (C, C) f32
        # softmax(rowmax(E) - E) == exp(rowmin(E) - E) / sum(...): one
        # reduction and one elementwise pass instead of two of each, and it is
        # exactly the numerically-stable form of the reference softmax.
        e_min = jnp.min(energy, axis=-1, keepdims=True)
        e = jnp.exp(e_min - energy)
        denom = jnp.sum(e, axis=-1, keepdims=True)
        attn_ref[0] = (e / denom).astype(attn_ref.dtype)


# ---------------------------------------------------------------------------
# Kernel 2: out_tile = gamma * (attn @ x_tile) + x_tile, per N tile.
# ---------------------------------------------------------------------------
def _apply_attn_kernel(gamma_ref, attn_ref, x_ref, o_ref, *, precision):
    xt = x_ref[0]                                               # (C, TN)
    attn = attn_ref[0].astype(xt.dtype)                         # bf16 MXU if input bf16
    out = lax.dot_general(
        attn, xt,
        dimension_numbers=(((1,), (0,)), ((), ())),
        preferred_element_type=jnp.float32,
        precision=precision,
    )                                                           # (C, TN) f32
    gamma = gamma_ref[0]
    o_ref[0] = (gamma * out + xt.astype(jnp.float32)).astype(o_ref.dtype)


def _round_up(v, m):
    return ((v + m - 1) // m) * m


def cam_module(x_nchw, gamma, *, tn_target=1024):
    """Channel attention module. x_nchw: (B, C, H, W), gamma: (1,) scalar param."""
    B, C, H, W = x_nchw.shape
    N = H * W

    # Lane-dense tiling: pad N up so every tile's last dim is a multiple of 128.
    if N <= tn_target:
        tn = _round_up(N, 128)
        n_pad = tn
    else:
        tn = tn_target
        n_pad = _round_up(N, tn)
    num_tiles = n_pad // tn

    x = x_nchw.reshape(B, C, N)
    if n_pad != N:
        # Zero columns contribute nothing to energy and produce zero output
        # columns (sliced off below), so padding is semantics-preserving.
        x = jnp.pad(x, ((0, 0), (0, 0), (0, n_pad - N)))

    gamma = jnp.asarray(gamma, dtype=jnp.float32).reshape((1,))

    # PyTorch runs this module in f32; match it by forcing full-f32 MXU passes
    # for f32 inputs (the softmax amplifies energy errors exponentially, so
    # default bf16 truncation is not acceptable here).  For bf16 inputs the
    # MXU is natively bf16 and this flag changes nothing.
    precision = (lax.Precision.HIGHEST
                 if x.dtype == jnp.float32 else lax.Precision.DEFAULT)

    # ---- pass 1: (B, C, C) attention maps -------------------------------
    attn = pl.pallas_call(
        functools.partial(_energy_softmax_kernel, precision=precision),
        out_shape=jax.ShapeDtypeStruct((B, C, C), jnp.float32),
        grid_spec=pltpu.PrefetchScalarGridSpec(
            num_scalar_prefetch=0,
            grid=(B, num_tiles),
            in_specs=[
                pl.BlockSpec((1, C, tn), lambda b, k: (b, 0, k)),   # x tile
            ],
            out_specs=pl.BlockSpec((1, C, C), lambda b, k: (b, 0, 0)),
            scratch_shapes=[pltpu.VMEM((C, C), jnp.float32)],
        ),
        compiler_params=pltpu.CompilerParams(
            dimension_semantics=("parallel", "arbitrary"),
        ),
    )(x)

    # ---- pass 2: out = gamma * (attn @ x) + x, tiled over N --------------
    out = pl.pallas_call(
        functools.partial(_apply_attn_kernel, precision=precision),
        out_shape=jax.ShapeDtypeStruct((B, C, n_pad), x.dtype),
        grid_spec=pltpu.PrefetchScalarGridSpec(
            num_scalar_prefetch=0,
            grid=(B, num_tiles),
            in_specs=[
                pl.BlockSpec(memory_space=pltpu.MemorySpace.SMEM),   # gamma
                pl.BlockSpec((1, C, C), lambda b, n: (b, 0, 0)),     # attn
                pl.BlockSpec((1, C, tn), lambda b, n: (b, 0, n)),    # x tile
            ],
            out_specs=pl.BlockSpec((1, C, tn), lambda b, n: (b, 0, n)),
        ),
        compiler_params=pltpu.CompilerParams(
            # Both axes independent -> shards across both v7x TensorCores
            # even when B == 1 (harmless on single-TC v5e/v6e).
            dimension_semantics=("parallel", "parallel"),
        ),
    )(gamma, attn, x)

    return out[:, :, :N].reshape(B, C, H, W)


def cam_reference(x_nchw, gamma):
    """Pure-JAX reference matching the PyTorch forward exactly (full f32)."""
    B, C, H, W = x_nchw.shape
    x = x_nchw.reshape(B, C, H * W).astype(jnp.float32)
    energy = jnp.einsum("bcn,bdn->bcd", x, x, precision="highest")
    energy_new = jnp.max(energy, axis=-1, keepdims=True) - energy
    attn = jax.nn.softmax(energy_new, axis=-1)
    out = jnp.einsum("bcd,bdn->bcn", attn, x, precision="highest")
    out = out.reshape(B, C, H, W)
    return (gamma[0] * out + x.reshape(B, C, H, W)).astype(x_nchw.dtype)


if __name__ == "__main__":
    key = jax.random.PRNGKey(0)
    B, C, H, W = 2, 8, 16, 16
    x = jax.random.normal(key, (B, C, H, W), dtype=jnp.float32)

    # Parameter from CAM_Module.__init__: gamma = zeros(1).
    # Use a non-zero value so the attention path is exercised.
    gamma = jnp.array([0.5], dtype=jnp.float32)

    y = jax.block_until_ready(cam_module(x, gamma))
    y_ref = cam_reference(x, gamma)
    assert y.shape == (B, C, H, W)
    assert jnp.allclose(y, y_ref, atol=2e-3, rtol=2e-3), "mismatch vs reference"

    # Exercise the multi-tile accumulation path (N=256 split into 128-wide tiles).
    y_tiled = jax.block_until_ready(cam_module(x, gamma, tn_target=128))
    assert jnp.allclose(y_tiled, y_ref, atol=2e-3, rtol=2e-3), "tiled mismatch"

    # gamma = 0 (the actual init value) -> identity residual, exact.
    y0 = jax.block_until_ready(cam_module(x, jnp.zeros((1,), jnp.float32)))
    assert jnp.allclose(y0, x, atol=1e-5)

    print("KERNEL_OK")
</pallas_src>

<mosaic_0001>
module attributes {stable_mosaic.version = 11 : i64} {
  func.func @_energy_softmax_kernel(%arg0: i32, %arg1: i32, %arg2: memref<1x8x256xf32, #tpu.memory_space<vmem>>, %arg3: memref<1x8x8xf32, #tpu.memory_space<vmem>>, %arg4: memref<8x8xf32, #tpu.memory_space<vmem>>) attributes {dimension_semantics = [#tpu.dimension_semantics<parallel>, #tpu.dimension_semantics<arbitrary>], iteration_bounds = array<i64: 2, 1>, scalar_prefetch = 0 : i64, scratch_operands = 1 : i64, tpu.core_type = #tpu.core_type<tc>, window_params = [{transform_indices = @transform_0, window_bounds = array<i64: 1, 8, 256>}, {transform_indices = @transform_1, window_bounds = array<i64: 1, 8, 8>}]} {
    %c0_i32 = arith.constant 0 : i32
    %0 = arith.cmpi eq, %arg1, %c0_i32 : i32
    %1 = arith.extui %0 : i1 to i32
    %c0_i32_0 = arith.constant 0 : i32
    %2 = arith.cmpi ne, %1, %c0_i32_0 : i32
    scf.if %2 {
      %cst_9 = arith.constant 0.000000e+00 : f32
      %12 = vector.broadcast %cst_9 : f32 to vector<8x8xf32>
      %c0_10 = arith.constant 0 : index
      %c0_11 = arith.constant 0 : index
      %13 = vector.load %arg4[%c0_10, %c0_11] : memref<8x8xf32, #tpu.memory_space<vmem>>, vector<8x8xf32>
      tpu.vector_store %arg4[%c0_10, %c0_11], %12 {strides = array<i32>} : memref<8x8xf32, #tpu.memory_space<vmem>>, vector<8x8xf32>,
    } else {
    }
    %c0 = arith.constant 0 : index
    %c0_1 = arith.constant 0 : index
    %c0_2 = arith.constant 0 : index
    %3 = vector.load %arg2[%c0, %c0_1, %c0_2] : memref<1x8x256xf32, #tpu.memory_space<vmem>>, vector<1x8x256xf32>
    %4 = vector.shape_cast %3 : vector<1x8x256xf32> to vector<8x256xf32>
    %c0_3 = arith.constant 0 : index
    %c0_4 = arith.constant 0 : index
    %5 = vector.load %arg4[%c0_3, %c0_4] : memref<8x8xf32, #tpu.memory_space<vmem>>, vector<8x8xf32>
    %cst = arith.constant dense<0.000000e+00> : vector<8x8xf32>
    %6 = tpu.matmul %4, %4, %cst {dimension_numbers = #tpu.dot_dimension_numbers<[1], [1], [0], [0], [0, 0, 1, 0], [], []>, precision = #tpu.contract_precision<fp32>} : vector<8x256xf32>, vector<8x256xf32>, vector<8x8xf32> -> vector<8x8xf32>
    %7 = arith.addf %5, %6 : vector<8x8xf32>
    %c0_5 = arith.constant 0 : index
    %c0_6 = arith.constant 0 : index
    %8 = vector.load %arg4[%c0_5, %c0_6] : memref<8x8xf32, #tpu.memory_space<vmem>>, vector<8x8xf32>
    tpu.vector_store %arg4[%c0_5, %c0_6], %7 {strides = array<i32>} : memref<8x8xf32, #tpu.memory_space<vmem>>, vector<8x8xf32>,
    %c0_i32_7 = arith.constant 0 : i32
    %9 = arith.cmpi eq, %arg1, %c0_i32_7 : i32
    %10 = arith.extui %9 : i1 to i32
    %c0_i32_8 = arith.constant 0 : i32
    %11 = arith.cmpi ne, %10, %c0_i32_8 : i32
    scf.if %11 {
      %c0_9 = arith.constant 0 : index
      %c0_10 = arith.constant 0 : index
      %12 = vector.load %arg4[%c0_9, %c0_10] : memref<8x8xf32, #tpu.memory_space<vmem>>, vector<8x8xf32>
      %cst_11 = arith.constant dense<0x7F800000> : vector<8xf32>
      %13 = vector.multi_reduction <minimumf>, %12, %cst_11 [1] : vector<8x8xf32> to vector<8xf32>
      %14 = vector.shape_cast %13 : vector<8xf32> to vector<8x1xf32>
      %15 = vector.broadcast %14 : vector<8x1xf32> to vector<8x8xf32>
      %16 = arith.subf %15, %12 : vector<8x8xf32>
      %17 = math.exp %16 : vector<8x8xf32>
      %cst_12 = arith.constant dense<0.000000e+00> : vector<8xf32>
      %18 = vector.multi_reduction <add>, %17, %cst_12 [1] : vector<8x8xf32> to vector<8xf32>
      %19 = vector.shape_cast %18 : vector<8xf32> to vector<8x1xf32>
      %20 = vector.broadcast %19 : vector<8x1xf32> to vector<8x8xf32>
      %21 = arith.divf %17, %20 : vector<8x8xf32>
      %c0_13 = arith.constant 0 : index
      %c0_14 = arith.constant 0 : index
      %c0_15 = arith.constant 0 : index
      %22 = vector.load %arg3[%c0_13, %c0_14, %c0_15] : memref<1x8x8xf32, #tpu.memory_space<vmem>>, vector<1x8x8xf32>
      %23 = vector.shape_cast %22 : vector<1x8x8xf32> to vector<8x8xf32>
      %24 = vector.shape_cast %21 : vector<8x8xf32> to vector<1x8x8xf32>
      tpu.vector_store %arg3[%c0_13, %c0_14, %c0_15], %24 {strides = array<i32>} : memref<1x8x8xf32, #tpu.memory_space<vmem>>, vector<1x8x8xf32>,
    } else {
    }
    return
  }
  func.func @transform_0(%arg0: i32, %arg1: i32) -> (i32, i32, i32) {
    %c0_i32 = arith.constant 0 : i32
    %c0_i32_0 = arith.constant 0 : i32
    return %arg0, %c0_i32, %arg1 : i32, i32, i32
  }
  func.func @transform_1(%arg0: i32, %arg1: i32) -> (i32, i32, i32) {
    %c0_i32 = arith.constant 0 : i32
    %c0_i32_0 = arith.constant 0 : i32
    %c0_i32_1 = arith.constant 0 : i32
    return %arg0, %c0_i32, %c0_i32_0 : i32, i32, i32
  }
}

</mosaic_0001>

<bundles_post_ra>
// kernel: tpu_custom_call.1
= control target key start
LH: loop header
LB: loop body
LE: loop exit
PB: predicated region body
PF: predicated region fallthrough
CT: control target
= control target key end

     0   :  { %6 = vsyncpa [#allocation4], 0  ;;  %s1132_s0 = inlined_call_operand.hbm [shape: f32[2,8,256], index: 0, kind: input, shape index: {}]   ;;  %s1133_s1 = inlined_call_operand.hbm [shape: f32[2,8,8], index: 1, kind: output, shape index: {}]  }
   0x1   :  { %8 = vsyncpa [#allocation4 + $0x1], 0 }
   0x2   :  { %9 = vsyncpa [#allocation5], 0 }
   0x3   :  { %11 = vsyncpa [#allocation5 + $0x1], 0  ;;  %s954_s6 = smov 0   ;;  %s956_s7 = smov 0  }
   0x4   :  { %s958_s8 = smov 0   ;;  %s960_s9 = smov 0  }
   0x5   :  { %s962_s10 = smov 0   ;;  %s964_s11 = smov 0  }
   0x6 LB: > { %s745_s12 = sadd.s32 4294967295, %s939_s11   ;;  %s746_s13 = sadd.s32 4294967294, %s939_s11   ;;  %s939_s11 = sphi %s964_s11, %s17_s11   ;;  %s935_s10 = sphi %s962_s10, %s1149_s10   ;;  %s931_s9 = sphi %s960_s9, %s1148_s9   ;;  %s927_s8 = sphi %s958_s8, %s1147_s8   ;;  %s923_s7 = sphi %s956_s7, %s1146_s7   ;;  %s919_s6 = sphi %s954_s6, %s1145_s6  }
   0x7   : > { %s29_s14 = sadd.s32 1, %s935_s10  ;;  %s38_s15 = sadd.s32 1, %s927_s8 }
   0x8   : > { %p31_p0 = scmp.ge.s32.totalorder %s29_s14, 2  ;;  %p45_p1 = scmp.ne.s32.totalorder %s927_s8, %s923_s7 }
   0x9   : > { %p46_p2 = scmp.eq.s32.totalorder %s939_s11, 0  ;;  %p51_p3 = scmp.ne.s32.totalorder %s923_s7, %s919_s6 }
   0xa   : > { %s1151_s14 = smov (%p31_p0, %s29_s14), 0  ;;  %p52_p5 = scmp.eq.s32.totalorder %s745_s12, 0 }
   0xb   : > { %p995_p4 = por %p46_p2, %p45_p1  ;;  %s33_s17 = ssub.s32 %s935_s10, %s1151_s14 }
   0xc   : > { %p75_p6 = scmp.eq.s32.totalorder %s745_s12, 1  ;;  %p36_p7 = scmp.eq.s32.totalorder %s33_s17, 0 }
   0xd   : > { %p1001_p8 = por %p52_p5, %p51_p3  ;;  %p81_p10 = scmp.eq.s32.totalorder %s746_s13, 1 }
   0xe   : > { %p1005_p9 = por %p75_p6, %p45_p1  ;;  %p772_p13 = scmp.lt.s32.totalorder %s939_s11, 2 }
   0xf   : > { %s1010_s20 = scalar_select %p36_p7, %s927_s8, %s38_s15  }
  0x10   : > { %s1137_s19 = scalar_select %p1005_p9, 1, 0 }
  0x11   : > { %p1012_p11 = por %p81_p10, %p51_p3  ;;  %s101_s22 = sand.u32 1, %s927_s8  }
  0x12   : > { %s749_s23 = sshll.u32 %s101_s22, 4  ;;  %s759_s24 = sshll.u32 %s935_s10, 8 }
  0x13   : > { %s1138_s21 = scalar_select %p1012_p11, 1, 0 }
  0x14   : > { %s1023_s27 = scalar_lea.hbm %s1132_s0, %s759_s24  ;;  %s105_s28 = scalar_lea.vmem [#allocation3], %s749_s23 }
  0x15   : > { %s115_s29 = sshll.u32 %s105_s28, 4  ;;  %p1029_p0 = pnand %p772_p13, %p995_p4  ;;  %s1025_s29 = int_to_ptr.vmem [resolvable:$true] %s115_s29 }
  0x16   : > { %s102_s2 = scalar_lea.sflag [#allocation4], %s101_s22  ;;  %s827_s3 = scalar_lea.hbm %s1023_s27, 256 }
  0x17   : > { %p828_p3 = scmp.ne.s32.totalorder %s1023_s27, %s827_s3  ;;  %p829_p5 = pneg %p1029_p0 }
  0x18   : > { %s832_s12 = scalar_lea.hbm %s1132_s0, 512  ;;  %p833_p4 = scmp.lt.u32.totalorder %s1023_s27, %s1132_s0 }
  0x19   : > { %p830_p6 = pnand %p829_p5, %p828_p3  ;;  %p834_p10 = scmp.lt.u32.totalorder %s832_s12, %s827_s3 }
  0x1a   : > { %p836_p12 = scmp.lt.u32.totalorder %s827_s3, %s1023_s27 }
  0x1b   : > { %p831_p7 = pneg %p830_p6  ;;  %p835_p13 = por %p834_p10, %p833_p4 }
  0x1d   : > { %p837_p1 = por %p836_p12, %p835_p13 }
  0x1f   : > { %p838_p2 = pnand %p837_p1, %p831_p7 }
  0x21   : > { %841 = shalt.err (!%p838_p2)
}
  0x22   : > { %s842_s16 = scalar_lea.vmem %s1025_s29, 256  ;;  %s941_s17 = smov [#allocation3]  }
  0x23   : > { %p843_p3 = scmp.ne.s32.totalorder %s1025_s29, %s842_s16  ;;  %s847_s22 = sshll.u32 %s941_s17, 4  ;;  %s848_s22 = int_to_ptr.vmem [resolvable:$false] %s847_s22 }
  0x24   : > { %s849_s23 = scalar_lea.vmem %s848_s22, 512  ;;  %p850_p9 = scmp.lt.s32.totalorder %s1025_s29, %s848_s22 }
  0x25   : > { %p845_p6 = pnand %p843_p3, %p829_p5  ;;  %p851_p4 = scmp.lt.s32.totalorder %s849_s23, %s842_s16 }
  0x27   : > { %p846_p11 = pneg %p845_p6  ;;  %p852_p10 = por %p851_p4, %p850_p9 }
  0x29   : > { %p853_p12 = pnand %p852_p10, %p846_p11 }
  0x2b   : > { %856 = shalt.err (!%p853_p12)
}
  0x2c   : > { %767 = dma.hbm_to_vmem [thread:$0]  (!%p1029_p0), %s1023_s27, 256, %s1025_s29, %s102_s2  }
  0x2d   : > { %p1140_p1 = scmp.lt.s32.totalorder %s939_s11, 3  ;;  %p1141_p2 = scmp.ge.s32.totalorder %s939_s11, 1 }
  0x2f   : > { %p121_p5 = pnand %p1141_p2, %p1140_p1 }
  0x30   : > { %s1065_s24 = sand.u32 (!%p121_p5), 1, %s923_s7  }
  0x31   : > { %124 = sbr.rel (%p121_p5) target bundleno = 632 (0x278), region = 24  ;;  %s753_s25 = sshll.u32 (!%p121_p5), %s1065_s24, 4 }
  0x32   : > { %s127_s26 = scalar_lea.sflag (!%p121_p5), [#allocation4], %s1065_s24  ;;  %s130_s28 = scalar_lea.vmem (!%p121_p5), [#allocation3], %s753_s25 }
  0x38   : > { %910 = dma.done.wait (%p1001_p8), %s127_s26, 256  }
  0x39   : > { %912 = vsyncadd (%p1001_p8), %s127_s26, 4294967040  ;;  %v157_v0 = vld [vmem:[%s130_s28 + $0x8] sm:$0xff]  ;;  %v156_v1 = vld [vmem:[%s130_s28] sm:$0xff]  ;;  %vm154_vm0 = vcmask 64512   ;;  %v942_v12 = vmov 0.0   ;;  %s754_s18 = sshll.u32 %s1065_s24, 3 }
  0x3a   : > { %v159_v2 = vand.u32 4294901760, %v157_v0  ;;  %v161_v3 = vand.u32 4294901760, %v156_v1  ;;  %155 = vst.msk [vmem:[#allocation2] sm:$0xff] %vm154_vm0, %v942_v12  ;;  %s756_s27 = sshll.u32 %s931_s9, 7  ;;  %s148_s29 = scalar_lea.vmem [#allocation6], %s754_s18 }
  0x3b   : > { %s664_s30 = sshll.u32 %s148_s29, 4  ;;  %s1082_s4 = scalar_lea.hbm %s1133_s1, %s756_s27  ;;  %s1084_s30 = int_to_ptr.vmem [resolvable:$true] %s664_s30 }
  0x3c   : > { %160 = vmatprep.subr.mxu0 %v159_v2  ;;  %v226_v4 = vsub.f32 %v157_v0, %v159_v2  ;;  %v232_v5 = vsub.f32 %v156_v1, %v161_v3  ;;  %316 = vmatprep.mubr.f32.mxu1 %v159_v2  ;;  %s651_s5 = scalar_lea.sflag [#allocation5], %s1065_s24  ;;  %s857_s12 = scalar_lea.vmem %s1084_s30, 128 }
  0x3d   : > { %162 = vmatpush1.xpose.msra.mxu0 %v161_v3  ;;  %p858_p8 = scmp.ne.s32.totalorder %s1084_s30, %s857_s12  ;;  %p1142_p9 = scmp.ne.s32.totalorder %s1137_s19, 0 }
  0x3e   : > { %v227_v6 = vand.u32 4294901760, %v226_v4  ;;  %v233_v7 = vand.u32 4294901760, %v232_v5  ;;  %325 = vmatprep.subr.mxu0 %v226_v4  ;;  %s943_s9 = smov [#allocation6]  }
  0x3f   : > { %p859_p11 = pnand %p858_p8, %p1142_p9  ;;  %s861_s13 = sshll.u32 %s943_s9, 4  ;;  %s862_s13 = int_to_ptr.vmem [resolvable:$false] %s861_s13 }
  0x40   : > { %v228_v8 = vsub.f32 %v226_v4, %v227_v6  ;;  %v234_v9 = vsub.f32 %v232_v5, %v233_v7  ;;  %s863_s15 = scalar_lea.vmem %s862_s13, 256  ;;  %p864_p7 = scmp.lt.s32.totalorder %s1084_s30, %s862_s13 }
  0x41   : > { %v158_v27 = vld [vmem:[#allocation2] sm:$0xff]  ;;  %p860_p0 = pneg %p859_p11  ;;  %p865_p13 = scmp.lt.s32.totalorder %s863_s15, %s857_s12 }
  0x42   : > { %v229_v10 = vand.u32 4294901760, %v228_v8  ;;  %v235_v11 = vand.u32 4294901760, %v234_v9 }
  0x43   : > { %p866_p3 = por %p865_p13, %p864_p7 }
  0x44   : > { %246 = vmatprep.subr.mxu1 %v229_v10  ;;  %230 = vmatprep.mubr.f32.mxu0 %v229_v10 }
  0x45   : > { %252 = vmatpush1.xpose.msra.mxu1 %v235_v11  ;;  %236 = vmatmul.mubr.f32.vlgmr.msra.gmra.mrb[0].mxu0 %v235_v11  ;;  %p867_p6 = pnand %p866_p3, %p860_p0 }
  0x46   : > { %328 = vmatpush1.xpose.msra.mxu0 %v232_v5  ;;  %402 = vmatprep.subr.mxu1 %v159_v2 }
  0x47   : > { %393 = vmatprep.mubr.f32.mxu0 %v226_v4  ;;  %482 = vmatprep.subr.mxu0 %v227_v6 }
  0x48   : > { %318 = vmatmul.mubr.f32.vlgmr.msra.gmra.mrb[0].mxu1 %v161_v3 }
  0x49   : > { %404 = vmatpush1.xpose.msra.mxu1 %v161_v3  ;;  %396 = vmatmul.mubr.f32.vlgmr.msra.gmra.mrb[2].mxu0 %v232_v5 }
  0x4a   : > { %470 = vmatprep.mubr.f32.mxu1 %v227_v6  ;;  %486 = vmatpush1.xpose.msra.mxu0 %v233_v7 }
  0x4b   : > { %558 = vmatprep.subr.mxu1 %v159_v2  ;;  %550 = vmatprep.mubr.f32.mxu0 %v159_v2 }
  0x4c   : > { %474 = vmatmul.mubr.f32.vlgmr.msra.gmra.mrb[2].mxu1 %v233_v7 }
  0x4d   : > { %560 = vmatpush1.xpose.msra.mxu1 %v161_v3  ;;  %552 = vmatmul.mubr.f32.vlgmr.msra.gmra.mrb[4].mxu0 %v161_v3 }
  0x4e   : > { %624 = vmatprep.mubr.f32.mxu1 %v159_v2 }
  0x50   : > { %626 = vmatmul.mubr.f32.vlgmr.msra.gmra.mrb[4].mxu1 %v161_v3 }
 0x118   : > { %v237_v13 = vpop.f32.mrb[0].mxu0 }
 0x119   : > { %v239_v14 = vpop.f32.mrb[1].mxu0 }
 0x11b   : > { %v319_v15 = vpop.f32.mrb[0].mxu1 }
 0x11c   : > { %v320_v16 = vadd.f32 %v319_v15, %v237_v13  ;;  %v321_v17 = vpop.f32.mrb[1].mxu1  ;;  %v397_v18 = vpop.f32.mrb[2].mxu0 }
 0x11d   : > { %v399_v19 = vpop.f32.mrb[3].mxu0 }
 0x11e   : > { %v398_v20 = vadd.f32 %v397_v18, %v320_v16 }
 0x11f   : > { %v475_v21 = vpop.f32.mrb[2].mxu1 }
 0x120   : > { %v476_v22 = vadd.f32 %v475_v21, %v398_v20  ;;  %v477_v23 = vpop.f32.mrb[3].mxu1  ;;  %v553_v24 = vpop.f32.mrb[4].mxu0 }
 0x121   : > { %v555_v25 = vpop.f32.mrb[5].mxu0 }
 0x122   : > { %v554_v26 = vadd.f32 %v553_v24, %v476_v22 }
 0x123   : > { %v627_v28 = vpop.f32.mrb[4].mxu1 }
 0x124   : > { %v628_v29 = vadd.f32 %v627_v28, %v554_v26  ;;  %v629_v30 = vpop.f32.mrb[5].mxu1 }
 0x126   : > { %v631_v31 = vadd.f32 %v628_v29, %v158_v27 }
 0x128   : > { %633 = vst.msk [vmem:[#allocation2] sm:$0xff] %vm154_vm0, %v631_v31 }
 0x12f   : > { %v637_v32 = vld [vmem:[#allocation2] sm:$0xff] }
 0x130   : > { %v638_v33 = vsel %vm154_vm0, %v637_v32, inf }
 0x131   : > { %639 = vmin.xlane.f32.xlu0 %v638_v33 }
 0x1be   : > { %v640_v34 = vpop.xlane.xlu0 %639 }
 0x1bf   : > { %v641_v35 = vsub.f32 %v640_v34, %v637_v32 }
 0x1c1   : > { %v642_v36 = vmul.f32 1.442695, %v641_v35 }
 0x1c3   : > { %823 = vpow2.f32 %v642_v36 }
 0x1cd   : > { %v824_v37 = vpop.eup %823 }
 0x1ce   : > { %v644_v38 = vsel %vm154_vm0, %v824_v37, 0.0 }
 0x1cf   : > { %645 = vadd.xlane.f32.xlu0 %v644_v38 }
 0x25c   : > { %v646_v39 = vpop.xlane.xlu0 %645 }
 0x25d   : > { %825 = vrcp.f32 %v646_v39 }
 0x267   : > { %v826_v40 = vpop.eup %825 }
 0x268   : > { %v648_v41 = vmul.f32 %v826_v40, %v824_v37 }
 0x26a   : > { %649 = vst.msk [vmem:[%s148_s29] sm:$0xff] %vm154_vm0, %v648_v41 }
 0x26b   : > { %870 = shalt.err (!%p867_p6)
}
 0x26c   : > { %s871_s16 = scalar_lea.hbm %s1082_s4, 128  ;;  %s875_s23 = scalar_lea.hbm %s1133_s1, 256 }
 0x26d   : > { %p872_p4 = scmp.ne.s32.totalorder %s1082_s4, %s871_s16  ;;  %p876_p1 = scmp.lt.u32.totalorder %s1082_s4, %s1133_s1 }
 0x26e   : > { %p877_p2 = scmp.lt.u32.totalorder %s875_s23, %s871_s16  ;;  %p879_p8 = scmp.lt.u32.totalorder %s871_s16, %s1082_s4 }
 0x26f   : > { %p873_p10 = pnand %p872_p4, %p1142_p9 }
 0x270   : > { %p878_p5 = por %p877_p2, %p876_p1 }
 0x271   : > { %p874_p12 = pneg %p873_p10 }
 0x272   : > { %p880_p11 = por %p879_p8, %p878_p5 }
 0x274   : > { %p881_p0 = pnand %p880_p11, %p874_p12 }
 0x276   : > { %884 = shalt.err (!%p881_p0)
}
 0x277   : > { %762 = dma.vmem_to_hbm [thread:$0]  (%p1142_p9), %s1084_s30, 128, %s1082_s4, %s651_s5  }
 0x278 PF: > { %s676_s26 = sand.u32 1, %s919_s6   ;;  %p1143_p7 = scmp.ne.s32.totalorder %s1138_s21, 0 }
 0x279   : > { %p1144_p13 = scmp.ge.s32.totalorder %s939_s11, 2  ;;  %s677_s28 = scalar_lea.sflag [#allocation5], %s676_s26 }
 0x27b   : > { %p769_p3 = pnand %p1144_p13, %p1143_p7 }
 0x27d   : > { %914 = dma.done.wait (!%p769_p3), %s677_s28, 128  }
 0x27e   : > { %916 = vsyncadd (!%p769_p3), %s677_s28, 4294967168  ;;  %s17_s11 = sadd.s32 1, %s939_s11   ;;  %s1145_s6 = smov %s923_s7 }
 0x27f   : > { %p14_p6 = scmp.ge.s32.totalorder %s17_s11, 4   ;;  %s1146_s7 = smov %s927_s8 }
 0x280   : > { %s1147_s8 = smov %s1010_s20  ;;  %s1148_s9 = smov %s935_s10 }
 0x281   : > { %s1149_s10 = smov %s1151_s14  ;;  %16 = sbr.rel (!%p14_p6) target bundleno = 6 (0x6), region = 77 }
 0x288   :  { %682 = vsyncpa [#allocation4], 1 }
 0x289   :  { %684 = vsyncpa [#allocation4 + $0x1], 1 }
 0x28a   :  { %685 = vsyncpa [#allocation5], 1 }
 0x28b   :  { %687 = vsyncpa [#allocation5 + $0x1], 1 }

</bundles_post_ra>
